<compile_context>
chip_gen: v5e
topology: v5e:2x2
jax: 0.10.0
libtpu: 0.0.40
codegen_flags: <defaults>
</compile_context>

<pallas_src>
import math

import jax
import jax.numpy as jnp
from jax.experimental import pallas as pl
from jax.experimental.pallas import tpu as pltpu


# ---------------------------------------------------------------------------
# Kernels
# ---------------------------------------------------------------------------
def _rbf_kernel_single_k(scale_ref, x_ref, w_ref, bias_ref, o_ref):
    """Whole reduction in one grid step: matmul + bias + cos + scale, fully fused."""
    acc = jnp.dot(x_ref[...], w_ref[...], preferred_element_type=jnp.float32)
    o_ref[...] = (scale_ref[0] * jnp.cos(acc + bias_ref[...])).astype(o_ref.dtype)


def _rbf_kernel_multi_k(scale_ref, x_ref, w_ref, bias_ref, o_ref):
    """Chunked reduction: accumulate directly into the resident f32 output block."""
    k = pl.program_id(2)

    @pl.when(k == 0)
    def _():
        o_ref[...] = jnp.zeros_like(o_ref)

    o_ref[...] += jnp.dot(x_ref[...], w_ref[...],
                          preferred_element_type=jnp.float32)

    @pl.when(k == pl.num_programs(2) - 1)
    def _():
        o_ref[...] = (scale_ref[0] * jnp.cos(o_ref[...] + bias_ref[...])
                      ).astype(o_ref.dtype)


# ---------------------------------------------------------------------------
# Wrapper
# ---------------------------------------------------------------------------
def _round_up(x, m):
    return (x + m - 1) // m * m


def rbf_random_features(x, weight, bias, log_lengthscales, log_scale,
                        *, use_bf16=False, max_tm=512, max_tn=512, max_tk=1024):
    """Pallas forward of RBFModulePyTorch.

    x:                [N, D] float32
    weight:           [M, D] float32  (PyTorch RandomProjectionModule layout)
    bias:             [M]    float32
    log_lengthscales: [D]    float32
    log_scale:        [1]    float32
    returns:          [N, M] float32
    """
    N, D = x.shape
    M = weight.shape[0]

    # Fold the lengthscale division into the static weight:
    #   (x / exp(log_ls)) @ W.T == x @ (W.T * exp(-log_ls)[:, None])
    inv_ls = jnp.exp(-log_lengthscales).astype(jnp.float32)            # [D]
    w_scaled = (weight.T * inv_ls[:, None]).astype(jnp.float32)        # [D, M]
    bias2d = bias.reshape(1, M).astype(jnp.float32)
    scale = (jnp.float32(math.sqrt(2.0)) * jnp.exp(log_scale)
             ).reshape(1).astype(jnp.float32)                          # [1] scalar

    # ---- tile selection ---------------------------------------------------
    # tm covers as much of N as possible (minimizes re-reads of the [D,M] weight,
    # the dominant HBM traffic when N is small), tn up to max_tn lanes, and
    # tk = whole (padded) D when it fits so the reduction grid axis collapses.
    tm = min(_round_up(N, 8), max_tm)
    tn = min(_round_up(M, 128), max_tn)
    Dp = _round_up(D, 128)
    if Dp <= max_tk:
        tk = Dp
    else:
        tk = max_tk
        Dp = _round_up(D, tk)

    Np = _round_up(N, tm)
    Mp = _round_up(M, tn)

    # ---- pad operands so tiles divide exactly (zero padding -> zero contributions)
    def pad2(a, rows, cols):
        pr, pc = rows - a.shape[0], cols - a.shape[1]
        return jnp.pad(a, ((0, pr), (0, pc))) if (pr or pc) else a

    in_dtype = jnp.bfloat16 if use_bf16 else jnp.float32
    x_p = pad2(x.astype(jnp.float32), Np, Dp).astype(in_dtype)
    w_p = pad2(w_scaled, Dp, Mp).astype(in_dtype)
    b_p = pad2(bias2d, 1, Mp)

    single_k = (tk == Dp)

    compiler_params = pltpu.CompilerParams(
        dimension_semantics=(("parallel", "parallel") if single_k
                             else ("parallel", "parallel", "arbitrary")),
        # Capped tiles (512x1024 + 1024x512 + 512x512 f32, double-buffered) stay
        # well under 32 MiB, which is safe on v5e/v6e/v7x scoped/physical VMEM.
        vmem_limit_bytes=32 * 1024 * 1024,
    )

    if single_k:
        grid = (Np // tm, Mp // tn)
        in_specs = [
            pl.BlockSpec(memory_space=pltpu.MemorySpace.SMEM),      # scale (scalar)
            pl.BlockSpec((tm, Dp), lambda i, j: (i, 0)),            # x tile
            pl.BlockSpec((Dp, tn), lambda i, j: (0, j)),            # weight tile
            pl.BlockSpec((1, tn), lambda i, j: (0, j)),             # bias tile
        ]
        out_specs = pl.BlockSpec((tm, tn), lambda i, j: (i, j))
        kernel = _rbf_kernel_single_k
    else:
        grid = (Np // tm, Mp // tn, Dp // tk)
        in_specs = [
            pl.BlockSpec(memory_space=pltpu.MemorySpace.SMEM),      # scale (scalar)
            pl.BlockSpec((tm, tk), lambda i, j, k: (i, k)),         # x tile
            pl.BlockSpec((tk, tn), lambda i, j, k: (k, j)),         # weight tile
            pl.BlockSpec((1, tn), lambda i, j, k: (0, j)),          # bias tile
        ]
        out_specs = pl.BlockSpec((tm, tn), lambda i, j, k: (i, j))
        kernel = _rbf_kernel_multi_k

    out_p = pl.pallas_call(
        kernel,
        out_shape=jax.ShapeDtypeStruct((Np, Mp), jnp.float32),
        grid_spec=pltpu.PrefetchScalarGridSpec(
            num_scalar_prefetch=0,
            grid=grid,
            in_specs=in_specs,
            out_specs=out_specs,
        ),
        compiler_params=compiler_params,
    )(scale, x_p, w_p, b_p)

    return out_p[:N, :M]


# ---------------------------------------------------------------------------
# Parameter init matching RBFModulePyTorch.__init__
# ---------------------------------------------------------------------------
def init_params(key, input_features, output_features,
                lengthscale="auto", scale=1.0):
    k_w, k_b = jax.random.split(key)
    # RandomProjectionModule: W ~ N(0, 1), shape (output_features, input_features)
    weight = jax.random.normal(k_w, (output_features, input_features), jnp.float32)
    # bias ~ U(0, 2*pi)
    bias = jax.random.uniform(k_b, (output_features,), jnp.float32,
                              minval=0.0, maxval=2.0 * math.pi)
    if lengthscale == "auto":
        log_lengthscale = 0.5 * math.log(input_features / 2.0)
    else:
        log_lengthscale = math.log(lengthscale)
    log_lengthscales = jnp.full((input_features,), log_lengthscale, jnp.float32)
    log_scale = jnp.full((1,), -0.5 * math.log(output_features) + math.log(scale),
                         jnp.float32)
    return weight, bias, log_lengthscales, log_scale


if __name__ == "__main__":
    # Small shapes consistent with the module's forward: data is [batch, input_features].
    batch = 16
    input_features = 256
    output_features = 256

    key = jax.random.PRNGKey(0)
    k_x, k_p = jax.random.split(key)
    x = jax.random.normal(k_x, (batch, input_features), jnp.float32)
    weight, bias, log_lengthscales, log_scale = init_params(
        k_p, input_features, output_features)

    # Pure-JAX reference of the PyTorch forward.
    data = x / jnp.exp(log_lengthscales)
    ref = math.sqrt(2.0) * jnp.exp(log_scale) * jnp.cos(data @ weight.T + bias)

    # 1) Default path: f32 MXU operands, whole reduction in one grid step.
    out = jax.block_until_ready(
        rbf_random_features(x, weight, bias, log_lengthscales, log_scale))
    assert out.shape == (batch, output_features)
    assert jnp.allclose(out, ref, atol=1e-4, rtol=1e-4)

    # 2) Force the chunked-reduction (3-D grid, accumulate-into-output) path.
    out_k = jax.block_until_ready(
        rbf_random_features(x, weight, bias, log_lengthscales, log_scale,
                            max_tk=128))
    assert jnp.allclose(out_k, ref, atol=1e-4, rtol=1e-4)

    # 3) bf16 MXU operands (v6e/v7x fast path), f32 accumulation + f32 epilogue.
    out_bf16 = jax.block_until_ready(
        rbf_random_features(x, weight, bias, log_lengthscales, log_scale,
                            use_bf16=True))
    assert jnp.allclose(out_bf16, ref, atol=1e-2, rtol=1e-2)

    print("KERNEL_OK")
</pallas_src>

<mosaic_0001>
module attributes {stable_mosaic.version = 11 : i64} {
  func.func @_rbf_kernel_single_k(%arg0: i32, %arg1: i32, %arg2: memref<1xf32, #tpu.memory_space<smem>>, %arg3: memref<16x256xf32, #tpu.memory_space<vmem>>, %arg4: memref<256x256xf32, #tpu.memory_space<vmem>>, %arg5: memref<1x256xf32, #tpu.memory_space<vmem>>, %arg6: memref<16x256xf32, #tpu.memory_space<vmem>>) attributes {dimension_semantics = [#tpu.dimension_semantics<parallel>, #tpu.dimension_semantics<parallel>], iteration_bounds = array<i64: 1, 1>, scalar_prefetch = 0 : i64, scratch_operands = 0 : i64, tpu.core_type = #tpu.core_type<tc>, window_params = [{transform_indices = @transform_0, window_bounds = array<i64: 1>}, {transform_indices = @transform_1, window_bounds = array<i64: 16, 256>}, {transform_indices = @transform_2, window_bounds = array<i64: 256, 256>}, {transform_indices = @transform_3, window_bounds = array<i64: 1, 256>}, {transform_indices = @transform_4, window_bounds = array<i64: 16, 256>}]} {
    %c0 = arith.constant 0 : index
    %c0_0 = arith.constant 0 : index
    %0 = vector.load %arg3[%c0, %c0_0] : memref<16x256xf32, #tpu.memory_space<vmem>>, vector<16x256xf32>
    %c0_1 = arith.constant 0 : index
    %c0_2 = arith.constant 0 : index
    %1 = vector.load %arg4[%c0_1, %c0_2] : memref<256x256xf32, #tpu.memory_space<vmem>>, vector<256x256xf32>
    %cst = arith.constant dense<0.000000e+00> : vector<16x256xf32>
    %2 = tpu.matmul %0, %1, %cst {dimension_numbers = #tpu.dot_dimension_numbers<[1], [0], [0], [1], [0, 0, 1, 1], [], []>} : vector<16x256xf32>, vector<256x256xf32>, vector<16x256xf32> -> vector<16x256xf32>
    %c0_3 = arith.constant 0 : index
    %3 = memref.load %arg2[%c0_3] : memref<1xf32, #tpu.memory_space<smem>>
    %c0_4 = arith.constant 0 : index
    %c0_5 = arith.constant 0 : index
    %4 = vector.load %arg5[%c0_4, %c0_5] : memref<1x256xf32, #tpu.memory_space<vmem>>, vector<1x256xf32>
    %5 = vector.broadcast %4 : vector<1x256xf32> to vector<16x256xf32>
    %6 = arith.addf %2, %5 : vector<16x256xf32>
    %7 = math.cos %6 : vector<16x256xf32>
    %8 = vector.broadcast %3 : f32 to vector<16x256xf32>
    %9 = arith.mulf %8, %7 : vector<16x256xf32>
    %c0_6 = arith.constant 0 : index
    %c0_7 = arith.constant 0 : index
    %10 = vector.load %arg6[%c0_6, %c0_7] : memref<16x256xf32, #tpu.memory_space<vmem>>, vector<16x256xf32>
    tpu.vector_store %arg6[%c0_6, %c0_7], %9 {strides = array<i32>} : memref<16x256xf32, #tpu.memory_space<vmem>>, vector<16x256xf32>,
    return
  }
  func.func @transform_0(%arg0: i32, %arg1: i32) -> i32 {
    %c0_i32 = arith.constant 0 : i32
    %c0_i32_0 = arith.constant 0 : i32
    return %c0_i32 : i32
  }
  func.func @transform_1(%arg0: i32, %arg1: i32) -> (i32, i32) {
    %c0_i32 = arith.constant 0 : i32
    %c0_i32_0 = arith.constant 0 : i32
    return %arg0, %c0_i32 : i32, i32
  }
  func.func @transform_2(%arg0: i32, %arg1: i32) -> (i32, i32) {
    %c0_i32 = arith.constant 0 : i32
    %c0_i32_0 = arith.constant 0 : i32
    return %c0_i32, %arg1 : i32, i32
  }
  func.func @transform_3(%arg0: i32, %arg1: i32) -> (i32, i32) {
    %c0_i32 = arith.constant 0 : i32
    %c0_i32_0 = arith.constant 0 : i32
    return %c0_i32, %arg1 : i32, i32
  }
  func.func @transform_4(%arg0: i32, %arg1: i32) -> (i32, i32) {
    %c0_i32 = arith.constant 0 : i32
    return %arg0, %arg1 : i32, i32
  }
}

</mosaic_0001>

<bundles_post_ra>
// kernel: tpu_custom_call.1
= control target key start
LH: loop header
LB: loop body
LE: loop exit
PB: predicated region body
PF: predicated region fallthrough
CT: control target
= control target key end

     0   :  { %10 = vsyncpa [#allocation4], 0  ;;  %s1465_s0 = inlined_call_operand.<no memory space> [shape: f32[1], index: 0, kind: input, shape index: {}]   ;;  %s1466_s1 = inlined_call_operand.hbm [shape: f32[16,256], index: 1, kind: input, shape index: {}]   ;;  %s1467_s2 = inlined_call_operand.hbm [shape: f32[256,256], index: 2, kind: input, shape index: {}]   ;;  %s1468_s3 = inlined_call_operand.vmem [shape: f32[1,256], index: 3, kind: input, shape index: {}]   ;;  %s1469_s4 = inlined_call_operand.hbm [shape: f32[16,256], index: 4, kind: output, shape index: {}]  }
   0x1   :  { %11 = vsyncpa [#allocation7], 0 }
   0x2   :  { %12 = vsyncpa [#allocation5], 0  ;;  %s19_s17 = sshll.u32 %s1466_s1, 4  ;;  %s965_s18 = smov [#allocation3]   ;;  %s20_s17 = int_to_ptr.hbm [resolvable:$true] %s19_s17 }
   0x3   :  { %s21_s19 = sshll.u32 %s965_s18, 4  ;;  %s32_s22 = sshll.u32 %s1467_s2, 4  ;;  %s22_s19 = int_to_ptr.vmem [resolvable:$true] %s21_s19  ;;  %s33_s22 = int_to_ptr.hbm [resolvable:$true] %s32_s22 }
   0x4   :  { %s966_s23 = smov 256   ;;  %s967_s24 = smov 16  }
   0x5   :  { %27 = dma.hbm_to_vmem [thread:$0]  %s20_s17, 512, %s22_s19, [#allocation4], %s966_s23, %s966_s23, %s967_s24  }
   0x6   :  { %s968_s25 = smov [#allocation6]  }
   0x7   :  { %s34_s26 = sshll.u32 %s968_s25, 4  ;;  %s35_s26 = int_to_ptr.vmem [resolvable:$true] %s34_s26 }
   0x8   :  { %40 = dma.hbm_to_vmem [thread:$0]  %s33_s22, 8192, %s35_s26, [#allocation7], %s966_s23, %s966_s23, %s967_s24  }
   0x9   :  { %959 = dma.done.wait [#allocation4], 512  }
   0xa   :  { %960 = vsyncadd [#allocation4], 4294966784 }
   0xb   :  { %961 = dma.done.wait [#allocation7], 8192  }
   0xc   :  { %962 = vsyncadd [#allocation7], 4294959104  ;;  %v85_v0 = vld [vmem:[#allocation6 + $0xf0] sm:$0xff]  ;;  %v86_v1 = vld [vmem:[#allocation6 + $0xf8] sm:$0xff]  ;;  %s849_s5 = sshll.u32 %s1469_s4, 4  ;;  %s850_s5 = int_to_ptr.hbm [resolvable:$true] %s849_s5 }
   0xd   :  { %v83_v2 = vld [vmem:[#allocation6 + $0xe0] sm:$0xff]  ;;  %126 = vmatpush.msra.mxu0 %v85_v0  ;;  %172 = vmatpush.msra.mxu2 %v86_v1  ;;  %v117_v3 = vld [vmem:[#allocation6 + $0x1f0] sm:$0xff]  ;;  %v84_v4 = vld [vmem:[#allocation6 + $0xe8] sm:$0xff] }
   0xe   :  { %v118_v5 = vld [vmem:[#allocation6 + $0x1f8] sm:$0xff]  ;;  %149 = vmatpush.msra.mxu1 %v117_v3  ;;  %v81_v6 = vld [vmem:[#allocation6 + $0xd0] sm:$0xff]  ;;  %v115_v7 = vld [vmem:[#allocation6 + $0x1e0] sm:$0xff] }
   0xf   :  { %195 = vmatpush.msra.mxu3 %v118_v5  ;;  %v82_v8 = vld [vmem:[#allocation6 + $0xd8] sm:$0xff]  ;;  %127 = vmatpush.msra.mxu0 %v83_v2  ;;  %v116_v9 = vld [vmem:[#allocation6 + $0x1e8] sm:$0xff]  ;;  %v113_v10 = vld [vmem:[#allocation6 + $0x1d0] sm:$0xff] }
  0x10   :  { %173 = vmatpush.msra.mxu2 %v84_v4  ;;  %150 = vmatpush.msra.mxu1 %v115_v7  ;;  %v79_v11 = vld [vmem:[#allocation6 + $0xc0] sm:$0xff]  ;;  %v80_v12 = vld [vmem:[#allocation6 + $0xc8] sm:$0xff]  ;;  %v114_v13 = vld [vmem:[#allocation6 + $0x1d8] sm:$0xff] }
  0x11   :  { %196 = vmatpush.msra.mxu3 %v116_v9  ;;  %128 = vmatpush.msra.mxu0 %v81_v6  ;;  %v111_v14 = vld [vmem:[#allocation6 + $0x1c0] sm:$0xff]  ;;  %v112_v15 = vld [vmem:[#allocation6 + $0x1c8] sm:$0xff]  ;;  %v77_v16 = vld [vmem:[#allocation6 + $0xb0] sm:$0xff] }
  0x12   :  { %174 = vmatpush.msra.mxu2 %v82_v8  ;;  %151 = vmatpush.msra.mxu1 %v113_v10  ;;  %v78_v17 = vld [vmem:[#allocation6 + $0xb8] sm:$0xff]  ;;  %v109_v18 = vld [vmem:[#allocation6 + $0x1b0] sm:$0xff]  ;;  %v75_v20 = vld [vmem:[#allocation6 + $0xa0] sm:$0xff] }
  0x13   :  { %197 = vmatpush.msra.mxu3 %v114_v13  ;;  %129 = vmatpush.msra.mxu0 %v79_v11  ;;  %v110_v19 = vld [vmem:[#allocation6 + $0x1b8] sm:$0xff]  ;;  %v76_v21 = vld [vmem:[#allocation6 + $0xa8] sm:$0xff]  ;;  %v107_v22 = vld [vmem:[#allocation6 + $0x1a0] sm:$0xff] }
  0x14   :  { %175 = vmatpush.msra.mxu2 %v80_v12  ;;  %152 = vmatpush.msra.mxu1 %v111_v14  ;;  %v108_v23 = vld [vmem:[#allocation6 + $0x1a8] sm:$0xff]  ;;  %v73_v24 = vld [vmem:[#allocation6 + $0x90] sm:$0xff]  ;;  %v74_v25 = vld [vmem:[#allocation6 + $0x98] sm:$0xff] }
  0x15   :  { %198 = vmatpush.msra.mxu3 %v112_v15  ;;  %130 = vmatpush.msra.mxu0 %v77_v16  ;;  %v105_v26 = vld [vmem:[#allocation6 + $0x190] sm:$0xff]  ;;  %v106_v27 = vld [vmem:[#allocation6 + $0x198] sm:$0xff]  ;;  %v71_v28 = vld [vmem:[#allocation6 + $0x80] sm:$0xff] }
  0x16   :  { %176 = vmatpush.msra.mxu2 %v78_v17  ;;  %153 = vmatpush.msra.mxu1 %v109_v18  ;;  %v72_v29 = vld [vmem:[#allocation6 + $0x88] sm:$0xff]  ;;  %v103_v30 = vld [vmem:[#allocation6 + $0x180] sm:$0xff]  ;;  %v69_v32 = vld [vmem:[#allocation6 + $0x70] sm:$0xff] }
  0x17   :  { %199 = vmatpush.msra.mxu3 %v110_v19  ;;  %131 = vmatpush.msra.mxu0 %v75_v20  ;;  %v104_v31 = vld [vmem:[#allocation6 + $0x188] sm:$0xff]  ;;  %v70_v33 = vld [vmem:[#allocation6 + $0x78] sm:$0xff]  ;;  %v101_v34 = vld [vmem:[#allocation6 + $0x170] sm:$0xff] }
  0x18   :  { %177 = vmatpush.msra.mxu2 %v76_v21  ;;  %154 = vmatpush.msra.mxu1 %v107_v22  ;;  %v102_v35 = vld [vmem:[#allocation6 + $0x178] sm:$0xff]  ;;  %v67_v36 = vld [vmem:[#allocation6 + $0x60] sm:$0xff]  ;;  %v68_v37 = vld [vmem:[#allocation6 + $0x68] sm:$0xff] }
  0x19   :  { %200 = vmatpush.msra.mxu3 %v108_v23  ;;  %132 = vmatpush.msra.mxu0 %v73_v24  ;;  %v99_v38 = vld [vmem:[#allocation6 + $0x160] sm:$0xff]  ;;  %v100_v39 = vld [vmem:[#allocation6 + $0x168] sm:$0xff]  ;;  %v65_v40 = vld [vmem:[#allocation6 + $0x50] sm:$0xff] }
  0x1a   :  { %178 = vmatpush.msra.mxu2 %v74_v25  ;;  %155 = vmatpush.msra.mxu1 %v105_v26  ;;  %v66_v41 = vld [vmem:[#allocation6 + $0x58] sm:$0xff]  ;;  %v97_v42 = vld [vmem:[#allocation6 + $0x150] sm:$0xff]  ;;  %v63_v44 = vld [vmem:[#allocation6 + $0x40] sm:$0xff] }
  0x1b   :  { %201 = vmatpush.msra.mxu3 %v106_v27  ;;  %133 = vmatpush.msra.mxu0 %v71_v28  ;;  %v98_v43 = vld [vmem:[#allocation6 + $0x158] sm:$0xff]  ;;  %v64_v45 = vld [vmem:[#allocation6 + $0x48] sm:$0xff]  ;;  %v95_v46 = vld [vmem:[#allocation6 + $0x140] sm:$0xff] }
  0x1c   :  { %179 = vmatpush.msra.mxu2 %v72_v29  ;;  %156 = vmatpush.msra.mxu1 %v103_v30  ;;  %v96_v47 = vld [vmem:[#allocation6 + $0x148] sm:$0xff]  ;;  %v61_v48 = vld [vmem:[#allocation6 + $0x30] sm:$0xff]  ;;  %v62_v49 = vld [vmem:[#allocation6 + $0x38] sm:$0xff]  ;;  %v969_v30 = vmov 683565275  }
  0x1d   :  { %202 = vmatpush.msra.mxu3 %v104_v31  ;;  %134 = vmatpush.msra.mxu0 %v69_v32  ;;  %v93_v50 = vld [vmem:[#allocation6 + $0x130] sm:$0xff]  ;;  %v94_v51 = vld [vmem:[#allocation6 + $0x138] sm:$0xff]  ;;  %v59_v52 = vld [vmem:[#allocation6 + $0x20] sm:$0xff]  ;;  %v970_v32 = vmov 2475754826  }
  0x1e   :  { %180 = vmatpush.msra.mxu2 %v70_v33  ;;  %157 = vmatpush.msra.mxu1 %v101_v34  ;;  %v60_v53 = vld [vmem:[#allocation6 + $0x28] sm:$0xff]  ;;  %v91_v54 = vld [vmem:[#allocation6 + $0x120] sm:$0xff]  ;;  %v57_v56 = vld [vmem:[#allocation6 + $0x10] sm:$0xff]  ;;  %v971_v34 = vmov 2131351028  }
  0x1f   :  { %203 = vmatpush.msra.mxu3 %v102_v35  ;;  %135 = vmatpush.msra.mxu0 %v67_v36  ;;  %v92_v55 = vld [vmem:[#allocation6 + $0x128] sm:$0xff]  ;;  %v58_v57 = vld [vmem:[#allocation6 + $0x18] sm:$0xff]  ;;  %v89_v58 = vld [vmem:[#allocation6 + $0x110] sm:$0xff]  ;;  %v972_v36 = vmov 2102212464  }
  0x20   :  { %181 = vmatpush.msra.mxu2 %v68_v37  ;;  %158 = vmatpush.msra.mxu1 %v99_v38  ;;  %v90_v59 = vld [vmem:[#allocation6 + $0x118] sm:$0xff]  ;;  %v55_v60 = vld [vmem:[#allocation6] sm:$0xff]  ;;  %v56_v61 = vld [vmem:[#allocation6 + $0x8] sm:$0xff]  ;;  %v973_v38 = vmov 920167782  }
  0x21   :  { %204 = vmatpush.msra.mxu3 %v100_v39  ;;  %136 = vmatpush.msra.mxu0 %v65_v40  ;;  %v51_v62 = vld [vmem:[#allocation3] sm:$0xff]  ;;  %v88_v0 = vld [vmem:[#allocation6 + $0x108] sm:$0xff]  ;;  %v53_v2 = vld [vmem:[#allocation3 + $0x10] sm:$0xff] }
  0x22   :  { %182 = vmatpush.msra.mxu2 %v66_v41  ;;  %159 = vmatpush.msra.mxu1 %v97_v42  ;;  %v87_v63 = vld [vmem:[#allocation6 + $0x100] sm:$0xff]  ;;  %v52_v1 = vld [vmem:[#allocation3 + $0x8] sm:$0xff]  ;;  %v54_v3 = vld [vmem:[#allocation3 + $0x18] sm:$0xff] }
  0x23   :  { %205 = vmatpush.msra.mxu3 %v98_v43  ;;  %137 = vmatpush.msra.mxu0 %v63_v44  ;;  %v1017_v4 = vld [vmem:[%s1468_s3] sm:$0x3] }
  0x24   :  { %183 = vmatpush.msra.mxu2 %v64_v45  ;;  %160 = vmatpush.msra.mxu1 %v95_v46  ;;  %v122_v5 = vperm.slane %v1017_v4, 0  ;;  %v123_v10 = vperm.slane %v1017_v4, 1 }
  0x25   :  { %206 = vmatpush.msra.mxu3 %v96_v47  ;;  %138 = vmatpush.msra.mxu0 %v61_v48  ;;  %v974_v47 = vmov 1326507024  }
  0x26   :  { %184 = vmatpush.msra.mxu2 %v62_v49  ;;  %161 = vmatpush.msra.mxu1 %v93_v50 }
  0x27   :  { %207 = vmatpush.msra.mxu3 %v94_v51  ;;  %139 = vmatpush.msra.mxu0 %v59_v52 }
  0x28   :  { %185 = vmatpush.msra.mxu2 %v60_v53  ;;  %162 = vmatpush.msra.mxu1 %v91_v54 }
  0x29   :  { %208 = vmatpush.msra.mxu3 %v92_v55  ;;  %140 = vmatpush.msra.mxu0 %v57_v56 }
  0x2a   :  { %186 = vmatpush.msra.mxu2 %v58_v57  ;;  %163 = vmatpush.msra.mxu1 %v89_v58 }
  0x2b   :  { %209 = vmatpush.msra.mxu3 %v90_v59  ;;  %141 = vmatpush.msra.mxu0 %v55_v60 }
  0x2c   :  { %187 = vmatpush.msra.mxu2 %v56_v61  ;;  %142 = vmatmul.f32.vlgmr.msra.gmra.mxu0 %v51_v62 }
  0x2d   :  { %188 = vmatmul.f32.vlgmr.msra.gmra.mxu2 %v51_v62  ;;  %164 = vmatpush.msra.mxu1 %v87_v63 }
  0x2e   :  { %210 = vmatpush.msra.mxu3 %v88_v0  ;;  %165 = vmatmul.f32.vlgmr.msra.gmra.mxu1 %v52_v1 }
  0x2f   :  { %211 = vmatmul.f32.vlgmr.msra.gmra.mxu3 %v52_v1 }
  0x34   :  { %145 = vmatmul.f32.gmra.mxu0 %v53_v2 }
  0x35   :  { %191 = vmatmul.f32.gmra.mxu2 %v53_v2 }
  0x36   :  { %168 = vmatmul.f32.gmra.mxu1 %v54_v3 }
  0x37   :  { %214 = vmatmul.f32.gmra.mxu3 %v54_v3 }
  0xa9   :  { %v143_v6 = vpop.f32.mrf.mxu0 }
  0xaa   :  { %v144_v7 = vadd.f32 %v143_v6, %v122_v5 }
  0xab   :  { %v166_v8 = vpop.f32.mrf.mxu1 }
  0xac   :  { %v1022_v9 = vadd.f32 %v166_v8, %v144_v7 }
  0xae   :  { %v221_v11 = vand.u32 2139095040, %v1022_v9  ;;  %v218_v12 = vand.u32 2147483647, %v1022_v9 }
  0xb0   :  { %v189_v13 = vpop.f32.mrf.mxu2  ;;  %v222_v14 = vshrl.u32 %v221_v11, 23  ;;  %v225_v19 = vand.u32 8388607, %v218_v12 }
  0xb1   :  { %v190_v15 = vadd.f32 %v189_v13, %v123_v10  ;;  %v146_v2 = vpop.f32.mrf.mxu0 }
  0xb2   :  { %v212_v16 = vpop.f32.mrf.mxu3  ;;  %v863_v17 = vadd.s32 4294967169, %v222_v14  ;;  %v226_v22 = vor.u32 8388608, %v225_v19 }
  0xb3   :  { %v1029_v18 = vadd.f32 %v212_v16, %v190_v15 }
  0xb4   :  { %v228_v20 = vadd.s32 1, %v863_v17  ;;  %v1040_v40 = vshll.u32 %v226_v22, 8  ;;  %v1062_v17 = vadd.f32 %v146_v2, %v122_v5 }
  0xb5   :  { %v375_v21 = vand.u32 2139095040, %v1029_v18  ;;  %v372_v24 = vand.u32 2147483647, %v1029_v18 }
  0xb6   :  { %vm229_vm0 = vcmp.gt.s32.totalorder %v228_v20, 0  ;;  %v267_v55 = vand.u32 65535, %v1040_v40  ;;  %v268_v7 = vshrl.u32 %v1040_v40, 16 }
  0xb7   :  { %v230_v23 = vsel %vm229_vm0, %v228_v20, 0  ;;  %v376_v25 = vshrl.u32 %v375_v21, 23  ;;  %v379_v41 = vand.u32 8388607, %v372_v24 }
  0xb8   :  { %v231_v26 = vshrl.u32 %v230_v23, 5  ;;  %v232_v27 = vand.u32 31, %v230_v23 }
  0xb9   :  { %v866_v28 = vadd.s32 4294967169, %v376_v25  ;;  %v380_v59 = vor.u32 8388608, %v379_v41 }
  0xba   :  { %v233_v29 = vsub.s32 32, %v232_v27  ;;  %v235_v31 = vshll.u32 %v969_v30, %v232_v27  ;;  %v238_v33 = vshll.u32 %v970_v32, %v232_v27  ;;  %v241_v35 = vshll.u32 %v971_v34, %v232_v27 }
  0xbb   :  { %v244_v37 = vshll.u32 %v972_v36, %v232_v27  ;;  %v247_v39 = vshll.u32 %v973_v38, %v232_v27  ;;  %vm250_vm1 = vcmp.lt.s32.totalorder %v231_v26, 1  ;;  %vm253_vm2 = vcmp.lt.s32.totalorder %v231_v26, 4 }
  0xbc   :  { %v236_v42 = vshrl.u32 %v970_v32, %v233_v29  ;;  %v239_v43 = vshrl.u32 %v971_v34, %v233_v29  ;;  %v242_v44 = vshrl.u32 %v972_v36, %v233_v29  ;;  %v234_v45 = vshrl.u32 %v969_v30, %v233_v29 }
  0xbd   :  { %v245_v46 = vshrl.u32 %v973_v38, %v233_v29  ;;  %v248_v48 = vshrl.u32 %v974_v47, %v233_v29  ;;  %v382_v52 = vadd.s32 1, %v866_v28  ;;  %vm252_vm3 = vcmp.lt.s32.totalorder %v231_v26, 3 }
  0xbe   :  { %v237_v49 = vor.u32 %v236_v42, %v235_v31  ;;  %v240_v50 = vor.u32 %v239_v43, %v238_v33  ;;  %v243_v51 = vor.u32 %v242_v44, %v241_v35  ;;  %vm251_vm4 = vcmp.lt.s32.totalorder %v231_v26, 2 }
  0xbf   :  { %v246_v53 = vor.u32 %v245_v46, %v244_v37  ;;  %v249_v54 = vor.u32 %v248_v48, %v247_v39  ;;  %vm383_vm5 = vcmp.gt.s32.totalorder %v382_v52, 0  ;;  %v1064_v19 = vshll.u32 %v380_v59, 8 }
  0xc0   :  { %v255_v56 = vsel %vm253_vm2, %v243_v51, 2102212464  ;;  %v258_v57 = vsel %vm250_vm1, %v237_v49, %v240_v50  ;;  %v262_v58 = vsel %vm250_vm1, %v240_v50, %v243_v51  ;;  %v254_v62 = vsel %vm250_vm1, %v234_v45, %v237_v49 }
  0xc1   :  { %v259_v60 = vsel %vm253_vm2, %v246_v53, 920167782  ;;  %v263_v61 = vsel %vm253_vm2, %v249_v54, 1326507024  ;;  %v256_v63 = vsel %vm252_vm3, %v240_v50, %v255_v56  ;;  %v384_v8 = vsel %vm383_vm5, %v382_v52, 0 }
  0xc2   :  { %v260_v0 = vsel %vm252_vm3, %v243_v51, %v259_v60  ;;  %v264_v1 = vsel %vm252_vm3, %v246_v53, %v263_v61  ;;  %v1058_v16 = vsel %vm251_vm4, %v254_v62, %v256_v63  ;;  %v1066_v22 = vshrl.u32 %v384_v8, 5 }
  0xc3   :  { %v261_v3 = vsel %vm251_vm4, %v258_v57, %v260_v0  ;;  %v265_v6 = vsel %vm251_vm4, %v262_v58, %v264_v1  ;;  %v386_v23 = vand.u32 31, %v384_v8  ;;  %v975_v45 = vmov 0  }
  0xc4   :  { %v269_v11 = vand.u32 65535, %v265_v6  ;;  %v270_v13 = vshrl.u32 %v265_v6, 16  ;;  %v291_v14 = vand.u32 65535, %v261_v3  ;;  %v292_v15 = vshrl.u32 %v261_v3, 16 }
  0xc5   :  { %v1068_v44 = vsub.s32 32, %v386_v23  ;;  %v389_v52 = vshll.u32 %v969_v30, %v386_v23  ;;  %v395_v61 = vshll.u32 %v971_v34, %v386_v23  ;;  %v398_v63 = vshll.u32 %v972_v36, %v386_v23 }
  0xc6   :  { %v272_v20 = vmul.u32 %v270_v13, %v267_v55  ;;  %v273_v21 = vmul.u32 %v269_v11, %v268_v7  ;;  %v271_v25 = vmul.u32 %v269_v11, %v267_v55  ;;  %v274_v27 = vmul.u32 %v270_v13, %v268_v7  ;;  %v169_v13 = vpop.f32.mrf.mxu1 }
  0xc7   :  { %v294_v28 = vmul.u32 %v292_v15, %v267_v55  ;;  %v295_v29 = vmul.u32 %v291_v14, %v268_v7  ;;  %v293_v26 = vmul.u32 %v291_v14, %v267_v55  ;;  %v296_v35 = vmul.u32 %v292_v15, %v268_v7 }
  0xc8   :  { %v275_v31 = vshll.u32 %v272_v20, 16  ;;  %v276_v33 = vshrl.u32 %v272_v20, 16  ;;  %v277_v37 = vshll.u32 %v273_v21, 16  ;;  %v278_v39 = vshrl.u32 %v273_v21, 16 }
  0xc9   :  { %v297_v41 = vshll.u32 %v294_v28, 16  ;;  %v298_v5 = vshrl.u32 %v294_v28, 16  ;;  %v299_v43 = vshll.u32 %v295_v29, 16  ;;  %v300_v48 = vshrl.u32 %v295_v29, 16 }
  0xca   :  { %vm279_vm6 = vc.u32 %v271_v25, %v275_v31  ;;  %v281_v42 = vadd.s32 %v275_v31, %v271_v25  ;;  %v392_v55 = vshll.u32 %v970_v32, %v386_v23  ;;  %v390_v58 = vshrl.u32 %v970_v32, %v1068_v44 }
  0xcb   :  { %v280_v46 = vsel %vm279_vm6, 1, %v975_v45  ;;  %vm301_vm7 = vc.u32 %v293_v26, %v297_v41  ;;  %v303_v49 = vadd.s32 %v297_v41, %v293_v26  ;;  %v393_v59 = vshrl.u32 %v971_v34, %v1068_v44 }
  0xcc   :  { %v282_v50 = vadd.s32 %v280_v46, %v274_v27  ;;  %vm283_vm8 = vc.u32 %v281_v42, %v277_v37  ;;  %v302_v51 = vsel %vm301_vm7, 1, %v975_v45  ;;  %v396_v62 = vshrl.u32 %v972_v36, %v1068_v44 }
  0xcd   :  { %v284_v53 = vsel %vm283_vm8, 1, %v975_v45  ;;  %v304_v54 = vadd.s32 %v302_v51, %v296_v35  ;;  %vm305_vm9 = vc.u32 %v303_v49, %v299_v43  ;;  %v1084_v1 = vor.u32 %v390_v58, %v389_v52 }
  0xce   :  { %v286_v56 = vadd.s32 %v284_v53, %v282_v50  ;;  %v306_v57 = vsel %vm305_vm9, 1, %v975_v45  ;;  %v1086_v2 = vor.u32 %v393_v59, %v392_v55  ;;  %v399_v3 = vshrl.u32 %v973_v38, %v1068_v44 }
  0xcf   :  { %v308_v60 = vadd.s32 %v306_v57, %v304_v54  ;;  %v1090_v7 = vor.u32 %v396_v62, %v395_v61  ;;  %v401_v8 = vshll.u32 %v973_v38, %v386_v23  ;;  %v402_v11 = vshrl.u32 %v974_v47, %v1068_v44 }
  0xd0   :  { %v287_v0 = vadd.s32 %v286_v56, %v276_v33  ;;  %v1097_v15 = vadd.s32 %v303_v49, %v299_v43  ;;  %v400_v20 = vor.u32 %v399_v3, %v398_v63  ;;  %vm404_vm10 = vcmp.lt.s32.totalorder %v1066_v22, 1 }
  0xd1   :  { %v309_v6 = vadd.s32 %v308_v60, %v298_v5  ;;  %v403_v25 = vor.u32 %v402_v11, %v401_v8  ;;  %vm407_vm11 = vcmp.lt.s32.totalorder %v1066_v22, 4  ;;  %v412_v23 = vsel %vm404_vm10, %v1084_v1, %v1086_v2 }
  0xd2   :  { %v1095_v14 = vadd.s32 %v287_v0, %v278_v39  ;;  %vm406_vm13 = vcmp.lt.s32.totalorder %v1066_v22, 3  ;;  %v413_v27 = vsel %vm407_vm11, %v400_v20, 920167782  ;;  %v1111_v28 = vadd.f32 %v169_v13, %v1062_v17 }
  0xd3   :  { %v310_v21 = vadd.s32 %v309_v6, %v300_v48  ;;  %vm405_vm14 = vcmp.lt.s32.totalorder %v1066_v22, 2  ;;  %v414_v31 = vsel %vm406_vm13, %v1090_v7, %v413_v27  ;;  %v416_v33 = vsel %vm404_vm10, %v1086_v2, %v1090_v7 }
  0xd4   :  { %vm313_vm12 = vc.u32 %v1095_v14, %v1097_v15  ;;  %v311_v26 = vmul.u32 %v1040_v40, %v1058_v16  ;;  %v415_v35 = vsel %vm405_vm14, %v412_v23, %v414_v31  ;;  %v417_v17 = vsel %vm407_vm11, %v403_v25, 1326507024 }
  0xd5   :  { %v314_v29 = vadd.s32 1, %v310_v21  ;;  %v421_v37 = vand.u32 65535, %v1064_v19  ;;  %v418_v41 = vsel %vm406_vm13, %v400_v20, %v417_v17  ;;  %v445_v5 = vand.u32 65535, %v415_v35 }
  0xd6   :  { %v446_v42 = vshrl.u32 %v415_v35, 16  ;;  %v419_v46 = vsel %vm405_vm14, %v416_v33, %v418_v41  ;;  %v422_v40 = vshrl.u32 %v1064_v19, 16  ;;  %v529_v16 = vand.u32 2139095040, %v1111_v28 }
  0xd7   :  { %v315_v39 = vsel %vm313_vm12, %v314_v29, %v310_v21  ;;  %v423_v48 = vand.u32 65535, %v419_v46  ;;  %v424_v49 = vshrl.u32 %v419_v46, 16  ;;  %v447_v56 = vmul.u32 %v445_v5, %v421_v37 }
  0xd8   :  { %v316_v43 = vadd.s32 %v315_v39, %v311_v26  ;;  %v448_v50 = vmul.u32 %v446_v42, %v421_v37  ;;  %v449_v52 = vmul.u32 %v445_v5, %v422_v40  ;;  %v530_v58 = vshrl.u32 %v529_v16, 23 }
  0xd9   :  { %v426_v53 = vmul.u32 %v424_v49, %v421_v37  ;;  %v427_v54 = vmul.u32 %v423_v48, %v422_v40  ;;  %v425_v59 = vmul.u32 %v423_v48, %v421_v37  ;;  %v428_v60 = vmul.u32 %v424_v49, %v422_v40 }
  0xda   :  { %v317_v51 = vadd.s32 536870912, %v316_v43  ;;  %v451_v57 = vshll.u32 %v448_v50, 16  ;;  %v450_v62 = vmul.u32 %v446_v42, %v422_v40  ;;  %v453_v3 = vshll.u32 %v449_v52, 16 }
  0xdb   :  { %v429_v61 = vshll.u32 %v426_v53, 16  ;;  %v431_v0 = vshll.u32 %v427_v54, 16  ;;  %v869_v21 = vadd.s32 4294967169, %v530_v58  ;;  %v409_v31 = vsel %vm407_vm11, %v1090_v7, 2102212464 }
  0xdc   :  { %v1134_v55 = vshrl.u32 %v317_v51, 30  ;;  %vm455_vm15 = vc.u32 %v447_v56, %v451_v57  ;;  %v457_v11 = vadd.s32 %v451_v57, %v447_v56  ;;  %v430_v33 = vshrl.u32 %v426_v53, 16 }
  0xdd   :  { %vm433_vm0 = vc.u32 %v425_v59, %v429_v61  ;;  %v435_v6 = vadd.s32 %v429_v61, %v425_v59  ;;  %v456_v8 = vsel %vm455_vm15, 1, %v975_v45  ;;  %v388_v37 = vshrl.u32 %v969_v30, %v1068_v44 }
  0xde   :  { %v319_v63 = vshll.u32 %v1134_v55, 30  ;;  %v434_v20 = vsel %vm433_vm0, 1, %v975_v45  ;;  %v458_v23 = vadd.s32 %v456_v8, %v450_v62  ;;  %vm459_vm2 = vc.u32 %v457_v11, %v453_v3 }
  0xdf   :  { %v436_v25 = vadd.s32 %v434_v20, %v428_v60  ;;  %vm437_vm1 = vc.u32 %v435_v6, %v431_v0  ;;  %v460_v35 = vsel %vm459_vm2, 1, %v975_v45  ;;  %v432_v39 = vshrl.u32 %v427_v54, 16 }
  0xe0   :  { %v1138_v13 = vsub.s32 %v316_v43, %v319_v63  ;;  %v438_v29 = vsel %vm437_vm1, 1, %v975_v45  ;;  %v452_v41 = vshrl.u32 %v448_v50, 16  ;;  %v462_v43 = vadd.s32 %v460_v35, %v458_v23 }
  0xe1   :  { %v440_v26 = vadd.s32 %v438_v29, %v436_v25  ;;  %v536_v46 = vadd.s32 1, %v869_v21  ;;  %v408_v40 = vsel %vm404_vm10, %v388_v37, %v1084_v1  ;;  %v410_v7 = vsel %vm406_vm13, %v1086_v2, %v409_v31 }
  0xe2   :  { %vm321_vm3 = vcmp.lt.s32.totalorder %v1138_v13, 0  ;;  %v322_v27 = vsub.s32 0, %v1138_v13  ;;  %v454_v16 = vshrl.u32 %v449_v52, 16  ;;  %v463_v51 = vadd.s32 %v462_v43, %v452_v41 }
  0xe3   :  { %v441_v42 = vadd.s32 %v440_v26, %v430_v33  ;;  %vm537_vm4 = vcmp.gt.s32.totalorder %v536_v46, 0  ;;  %v1159_v44 = vadd.s32 %v457_v11, %v453_v3  ;;  %v526_v50 = vand.u32 2147483647, %v1111_v28 }
  0xe4   :  { %v323_v17 = vsel %vm321_vm3, %v322_v27, %v1138_v13  ;;  %v538_v53 = vsel %vm537_vm4, %v536_v46, 0  ;;  %v411_v54 = vsel %vm405_vm14, %v408_v40, %v410_v7  ;;  %v464_v1 = vadd.s32 %v463_v51, %v454_v16 }
  0xe5   :  { %v324_v5 = vclz %v323_v17  ;;  %v1157_v49 = vadd.s32 %v441_v42, %v432_v39  ;;  %v540_v2 = vand.u32 31, %v538_v53  ;;  %v465_v58 = vmul.u32 %v1064_v19, %v411_v54 }
  0xe6   :  { %v468_v57 = vadd.s32 1, %v464_v1  ;;  %v533_v59 = vand.u32 8388607, %v526_v50  ;;  %v1179_v11 = vshrl.u32 %v538_v53, 5  ;;  %v312_v25 = vadd.s32 %v1097_v15, %v1095_v14 }
  0xe7   :  { %v864_v48 = vadd.s32 4294967294, %v324_v5  ;;  %vm467_vm6 = vc.u32 %v1157_v49, %v1159_v44  ;;  %v1169_v60 = vsub.s32 32, %v540_v2  ;;  %v543_v62 = vshll.u32 %v969_v30, %v540_v2 }
  0xe8   :  { %v469_v61 = vsel %vm467_vm6, %v468_v57, %v464_v1  ;;  %v546_v22 = vshll.u32 %v970_v32, %v540_v2  ;;  %v552_v63 = vshll.u32 %v972_v36, %v540_v2  ;;  %v549_v19 = vshll.u32 %v971_v34, %v540_v2 }
  0xe9   :  { %vm865_vm5 = vcmp.lt.s32.totalorder %v864_v48, 0  ;;  %v470_v0 = vadd.s32 %v469_v61, %v465_v58  ;;  %v544_v3 = vshrl.u32 %v970_v32, %v1169_v60  ;;  %v547_v6 = vshrl.u32 %v971_v34, %v1169_v60 }
  0xea   :  { %v327_v56 = vsel %vm865_vm5, 0, %v864_v48  ;;  %v550_v20 = vshrl.u32 %v972_v36, %v1169_v60  ;;  %v553_v21 = vshrl.u32 %v973_v38, %v1169_v60  ;;  %v555_v27 = vshll.u32 %v973_v38, %v540_v2 }
  0xeb   :  { %v332_v52 = vsub.s32 4294967266, %v327_v56  ;;  %v471_v23 = vadd.s32 536870912, %v470_v0  ;;  %v328_v29 = vsub.s32 32, %v327_v56  ;;  %v534_v31 = vor.u32 8388608, %v533_v59 }
  0xec   :  { %v1188_v33 = vor.u32 %v544_v3, %v543_v62  ;;  %v554_v26 = vor.u32 %v553_v21, %v552_v63  ;;  %v1192_v17 = vor.u32 %v547_v6, %v546_v22  ;;  %v1194_v37 = vor.u32 %v550_v20, %v549_v19 }
  0xed   :  { %v333_v8 = vadd.s32 127, %v332_v52  ;;  %v1190_v35 = vshrl.u32 %v471_v23, 30  ;;  %v556_v39 = vshrl.u32 %v974_v47, %v1169_v60  ;;  %vm558_vm7 = vcmp.lt.s32.totalorder %v1179_v11, 1 }
  0xee   :  { %vm560_vm8 = vcmp.lt.s32.totalorder %v1179_v11, 3  ;;  %vm561_vm9 = vcmp.lt.s32.totalorder %v1179_v11, 4  ;;  %v330_v5 = vshrl.u32 %v312_v25, %v328_v29  ;;  %v566_v46 = vsel %vm558_vm7, %v1188_v33, %v1192_v17 }
  0xef   :  { %v334_v41 = vshll.u32 %v333_v8, 23  ;;  %v473_v14 = vshll.u32 %v1190_v35, 30  ;;  %v557_v15 = vor.u32 %v556_v39, %v555_v27  ;;  %v567_v42 = vsel %vm561_vm9, %v554_v26, 920167782 }
  0xf0   :  { %v568_v40 = vsel %vm560_vm8, %v1194_v37, %v567_v42  ;;  %v329_v7 = vshll.u32 %v1138_v13, %v327_v56  ;;  %vm559_vm10 = vcmp.lt.s32.totalorder %v1179_v11, 2  ;;  %v1213_v48 = vshll.u32 %v534_v31, 8 }
  0xf1   :  { %v474_v43 = vsub.s32 %v470_v0, %v473_v14  ;;  %v335_v16 = vor.u32 4788187, %v334_v41  ;;  %v570_v53 = vsel %vm558_vm7, %v1192_v17, %v1194_v37  ;;  %v571_v54 = vsel %vm561_vm9, %v557_v15, 1326507024  ;;  %v192_v15 = vpop.f32.mrf.mxu2 }
  0xf2   :  { %v331_v1 = vor.u32 %v330_v5, %v329_v7  ;;  %v569_v2 = vsel %vm559_vm10, %v566_v46, %v568_v40  ;;  %v572_v13 = vsel %vm560_vm8, %v554_v26, %v571_v54  ;;  %v575_v59 = vand.u32 65535, %v1213_v48 }
  0xf3   :  { %vm475_vm11 = vcmp.lt.s32.totalorder %v474_v43, 0  ;;  %v476_v51 = vsub.s32 0, %v474_v43  ;;  %v336_v52 = vand.u32 2147483647, %v335_v16  ;;  %v573_v58 = vsel %vm559_vm10, %v570_v53, %v572_v13 }
  0xf4   :  { %v576_v61 = vshrl.u32 %v1213_v48, 16  ;;  %v577_v62 = vand.u32 65535, %v573_v58  ;;  %v578_v22 = vshrl.u32 %v573_v58, 16  ;;  %v600_v63 = vshrl.u32 %v569_v2, 16 }
  0xf5   :  { %v477_v56 = vsel %vm475_vm11, %v476_v51, %v474_v43  ;;  %v338_v0 = vcvt.s32.f32 %v331_v1  ;;  %v599_v20 = vand.u32 65535, %v569_v2  ;;  %v466_v29 = vadd.s32 %v1159_v44, %v1157_v49 }
  0xf6   :  { %v478_v57 = vclz %v477_v56  ;;  %v580_v6 = vmul.u32 %v578_v22, %v575_v59  ;;  %v581_v19 = vmul.u32 %v577_v62, %v576_v61  ;;  %v579_v25 = vmul.u32 %v577_v62, %v575_v59  ;;  %v215_v56 = vpop.f32.mrf.mxu3 }
  0xf7   :  { %v339_v8 = vmul.f32 %v338_v0, %v336_v52  ;;  %v602_v27 = vmul.u32 %v600_v63, %v575_v59  ;;  %v582_v26 = vmul.u32 %v578_v22, %v576_v61  ;;  %v603_v40 = vmul.u32 %v599_v20, %v576_v61 }
  0xf8   :  { %v867_v3 = vadd.s32 4294967294, %v478_v57  ;;  %v583_v23 = vshll.u32 %v580_v6, 16  ;;  %v585_v41 = vshll.u32 %v581_v19, 16  ;;  %vm220_vm15 = vcmp.lt.s32.totalorder %v1022_v9, 0 }
  0xf9   :  { %v340_v5 = vxor.u32 2147483648, %v339_v8  ;;  %v605_v51 = vshll.u32 %v602_v27, 16  ;;  %v193_v44 = vadd.f32 %v192_v15, %v123_v10  ;;  %vm1238_vm0 = vcmp.le.f32.partialorder %v218_v12, 0.7853982 }
  0xfa   :  { %vm868_vm12 = vcmp.lt.s32.totalorder %v867_v3, 0  ;;  %vm587_vm13 = vc.u32 %v579_v25, %v583_v23  ;;  %v589_v14 = vadd.s32 %v583_v23, %v579_v25  ;;  %v601_v13 = vmul.u32 %v599_v20, %v575_v59 }
  0xfb   :  { %v481_v21 = vsel %vm868_vm12, 0, %v867_v3  ;;  %v588_v46 = vsel %vm587_vm13, 1, %v975_v45  ;;  %v341_v52 = vsel %vm220_vm15, %v340_v5, %v339_v8  ;;  %v604_v58 = vmul.u32 %v600_v63, %v576_v61 }
  0xfc   :  { %v482_v31 = vsub.s32 32, %v481_v21  ;;  %v486_v39 = vsub.s32 4294967266, %v481_v21  ;;  %v590_v16 = vadd.s32 %v588_v46, %v582_v26  ;;  %vm591_vm14 = vc.u32 %v589_v14, %v585_v41 }
  0xfd   :  { %v483_v53 = vshll.u32 %v474_v43, %v481_v21  ;;  %v592_v49 = vsel %vm591_vm14, 1, %v975_v45  ;;  %v584_v43 = vshrl.u32 %v580_v6, 16  ;;  %v607_v22 = vshll.u32 %v603_v40, 16 }
  0xfe   :  { %v484_v42 = vshrl.u32 %v466_v29, %v482_v31  ;;  %v487_v7 = vadd.s32 127, %v486_v39  ;;  %v594_v2 = vadd.s32 %v592_v49, %v590_v16  ;;  %vm609_vm1 = vc.u32 %v601_v13, %v605_v51 }
  0xff   :  { %v611_v4 = vadd.s32 %v605_v51, %v601_v13  ;;  %v542_v10 = vshrl.u32 %v969_v30, %v1169_v60  ;;  %v610_v0 = vsel %vm609_vm1, 1, %v975_v45  ;;  %v1247_v3 = vadd.f32 %v215_v56, %v193_v44 }
 0x100   :  { %v488_v1 = vshll.u32 %v487_v7, 23  ;;  %v485_v57 = vor.u32 %v484_v42, %v483_v53  ;;  %v595_v12 = vadd.s32 %v594_v2, %v584_v43  ;;  %v563_v8 = vsel %vm561_vm9, %v1194_v37, 2102212464 }
 0x101   :  { %v612_v20 = vadd.s32 %v610_v0, %v604_v58  ;;  %vm613_vm2 = vc.u32 %v611_v4, %v607_v22  ;;  %v1255_v61 = vsel %vm1238_vm0, %v1022_v9, %v341_v52  ;;  %v586_v63 = vshrl.u32 %v581_v19, 16 }
 0x102   :  { %v489_v62 = vor.u32 4788187, %v488_v1  ;;  %v614_v60 = vsel %vm613_vm2, 1, %v975_v45  ;;  %v492_v6 = vcvt.s32.f32 %v485_v57  ;;  %v606_v21 = vshrl.u32 %v602_v27, 16 }
 0x103   :  { %v616_v25 = vadd.s32 %v614_v60, %v612_v20  ;;  %v562_v23 = vsel %vm558_vm7, %v542_v10, %v1188_v33  ;;  %v564_v37 = vsel %vm560_vm8, %v1192_v17, %v563_v8  ;;  %v1264_v29 = vadd.s32 %v595_v12, %v586_v63 }
 0x104   :  { %v490_v59 = vand.u32 2147483647, %v489_v62  ;;  %v683_v31 = vand.u32 2139095040, %v1247_v3  ;;  %v1269_v19 = vmul.f32 %v1255_v61, %v1255_v61  ;;  %v608_v39 = vshrl.u32 %v603_v40, 16 }
 0x105   :  { %v617_v27 = vadd.s32 %v616_v25, %v606_v21  ;;  %v615_v41 = vadd.s32 %v611_v4, %v607_v22  ;;  %v565_v33 = vsel %vm559_vm10, %v562_v23, %v564_v37  ;;  %v680_v40 = vand.u32 2147483647, %v1247_v3 }
 0x106   :  { %v493_v26 = vmul.f32 %v492_v6, %v490_v59  ;;  %v684_v14 = vshrl.u32 %v683_v31, 23  ;;  %v354_v5 = vmul.f32 -0.00019511016, %v1269_v19  ;;  %v619_v7 = vmul.u32 %v1213_v48, %v565_v33 }
 0x107   :  { %v618_v15 = vadd.s32 %v617_v27, %v608_v39  ;;  %vm621_vm3 = vc.u32 %v1264_v29, %v615_v41  ;;  %vm374_vm4 = vcmp.lt.s32.totalorder %v1029_v18, 0  ;;  %v347_v11 = vmul.f32 -0.001358992, %v1269_v19 }
 0x108   :  { %v872_v17 = vadd.s32 4294967169, %v684_v14  ;;  %v494_v42 = vxor.u32 2147483648, %v493_v26  ;;  %v355_v49 = vadd.f32 0.008332121, %v354_v5  ;;  %v342_v56 = vsub.s32 4, %v1134_v55 }
 0x109   :  { %v622_v46 = vadd.s32 1, %v618_v15  ;;  %vm1284_vm6 = vcmp.le.f32.partialorder %v372_v24, 0.7853982  ;;  %v687_v52 = vand.u32 8388607, %v680_v40  ;;  %v496_v10 = vsub.s32 4, %v1190_v35 }
 0x10a   :  { %v690_v16 = vadd.s32 1, %v872_v17  ;;  %v495_v44 = vsel %vm374_vm4, %v494_v42, %v493_v26  ;;  %v348_v62 = vadd.f32 0.041655596, %v347_v11  ;;  %v356_v22 = vmul.f32 %v355_v49, %v1269_v19 }
 0x10b   :  { %v623_v51 = vsel %vm621_vm3, %v622_v46, %v618_v15  ;;  %v1293_v57 = vsel %vm1284_vm6, %v1029_v18, %v495_v44  ;;  %v1304_v4 = vsel %vm220_vm15, %v342_v56, %v1134_v55  ;;  %v688_v0 = vor.u32 8388608, %v687_v52 }
 0x10c   :  { %v624_v53 = vadd.s32 %v623_v51, %v619_v7  ;;  %vm691_vm5 = vcmp.gt.s32.totalorder %v690_v16, 0  ;;  %v1309_v12 = vmul.f32 %v1293_v57, %v1293_v57  ;;  %v349_v55 = vmul.f32 %v348_v62, %v1269_v19 }
 0x10d   :  { %v692_v1 = vsel %vm691_vm5, %v690_v16, 0  ;;  %v357_v60 = vadd.f32 -0.16666654, %v356_v22  ;;  %v1327_v27 = vshll.u32 %v688_v0, 8  ;;  %v620_v16 = vadd.s32 %v615_v41, %v1264_v29 }
 0x10e   :  { %v625_v2 = vadd.s32 536870912, %v624_v53  ;;  %v694_v13 = vand.u32 31, %v692_v1  ;;  %v508_v31 = vmul.f32 -0.00019511016, %v1309_v12  ;;  %v1324_v26 = vshrl.u32 %v692_v1, 5 }
 0x10f   :  { %v350_v46 = vadd.f32 -0.4999988, %v349_v55  ;;  %v358_v7 = vmul.f32 %v357_v60, %v1269_v19  ;;  %v729_v41 = vand.u32 65535, %v1327_v27  ;;  %vm528_vm13 = vcmp.lt.s32.totalorder %v1111_v28, 0 }
 0x110   :  { %v1295_v43 = vshrl.u32 %v625_v2, 30  ;;  %v1297_v58 = vsub.s32 32, %v694_v13  ;;  %v697_v6 = vshll.u32 %v969_v30, %v694_v13  ;;  %v700_v23 = vshll.u32 %v970_v32, %v694_v13 }
 0x111   :  { %v706_v37 = vshll.u32 %v972_v36, %v694_v13  ;;  %v703_v39 = vshll.u32 %v971_v34, %v694_v13  ;;  %vm712_vm8 = vcmp.lt.s32.totalorder %v1324_v26, 1  ;;  %vm715_vm9 = vcmp.lt.s32.totalorder %v1324_v26, 4 }
 0x112   :  { %v627_v24 = vshll.u32 %v1295_v43, 30  ;;  %v698_v8 = vshrl.u32 %v970_v32, %v1297_v58  ;;  %v701_v20 = vshrl.u32 %v971_v34, %v1297_v58  ;;  %v707_v63 = vshrl.u32 %v973_v38, %v1297_v58 }
 0x113   :  { %v704_v21 = vshrl.u32 %v972_v36, %v1297_v58  ;;  %v709_v32 = vshll.u32 %v973_v38, %v694_v13  ;;  %v710_v36 = vshrl.u32 %v974_v47, %v1297_v58  ;;  %v501_v34 = vmul.f32 -0.001358992, %v1309_v12 }
 0x114   :  { %v628_v59 = vsub.s32 %v624_v53, %v627_v24  ;;  %v1329_v33 = vor.u32 %v698_v8, %v697_v6  ;;  %v1331_v15 = vor.u32 %v701_v20, %v700_v23  ;;  %v708_v17 = vor.u32 %v707_v63, %v706_v37 }
 0x115   :  { %v1333_v42 = vor.u32 %v704_v21, %v703_v39  ;;  %v711_v53 = vor.u32 %v710_v36, %v709_v32  ;;  %v509_v11 = vadd.f32 0.008332121, %v508_v31  ;;  %vm714_vm10 = vcmp.lt.s32.totalorder %v1324_v26, 3 }
 0x116   :  { %vm629_vm7 = vcmp.lt.s32.totalorder %v628_v59, 0  ;;  %v630_v25 = vsub.s32 0, %v628_v59  ;;  %v720_v38 = vsel %vm712_vm8, %v1329_v33, %v1331_v15  ;;  %v721_v47 = vsel %vm715_vm9, %v708_v17, 920167782 }
 0x117   :  { %vm713_vm12 = vcmp.lt.s32.totalorder %v1324_v26, 2  ;;  %v722_v29 = vsel %vm714_vm10, %v1333_v42, %v721_v47  ;;  %v724_v1 = vsel %vm712_vm8, %v1331_v15, %v1333_v42  ;;  %v730_v2 = vshrl.u32 %v1327_v27, 16 }
 0x118   :  { %v631_v14 = vsel %vm629_vm7, %v630_v25, %v628_v59  ;;  %v723_v44 = vsel %vm713_vm12, %v720_v38, %v722_v29  ;;  %v502_v13 = vadd.f32 0.041655596, %v501_v34  ;;  %v725_v62 = vsel %vm715_vm9, %v711_v53, 1326507024 }
 0x119   :  { %v632_v5 = vclz %v631_v14  ;;  %v510_v22 = vmul.f32 %v509_v11, %v1309_v12  ;;  %v726_v24 = vsel %vm714_vm10, %v708_v17, %v725_v62  ;;  %v753_v0 = vand.u32 65535, %v723_v44 }
 0x11a   :  { %v754_v8 = vshrl.u32 %v723_v44, 16  ;;  %v727_v60 = vsel %vm713_vm12, %v724_v1, %v726_v24  ;;  %v351_v6 = vmul.f32 %v350_v46, %v1269_v19  ;;  %v359_v37 = vadd.f32 1.0, %v358_v7 }
 0x11b   :  { %v870_v51 = vadd.s32 4294967294, %v632_v5  ;;  %v731_v21 = vand.u32 65535, %v727_v60  ;;  %v732_v25 = vshrl.u32 %v727_v60, 16  ;;  %v757_v14 = vmul.u32 %v753_v0, %v730_v2 }
 0x11c   :  { %v756_v23 = vmul.u32 %v754_v8, %v729_v41  ;;  %v503_v5 = vmul.f32 %v502_v13, %v1309_v12  ;;  %v511_v17 = vadd.f32 -0.16666654, %v510_v22  ;;  %vm1374_vm14 = vcmp.le.f32.partialorder %v526_v50, 0.7853982 }
 0x11d   :  { %vm871_vm11 = vcmp.lt.s32.totalorder %v870_v51, 0  ;;  %v735_v32 = vmul.u32 %v731_v21, %v730_v2  ;;  %v755_v46 = vmul.u32 %v753_v0, %v729_v41  ;;  %v758_v34 = vmul.u32 %v754_v8, %v730_v2 }
 0x11e   :  { %v635_v49 = vsel %vm871_vm11, 0, %v870_v51  ;;  %v759_v7 = vshll.u32 %v756_v23, 16  ;;  %v733_v51 = vmul.u32 %v731_v21, %v729_v41  ;;  %v736_v53 = vmul.u32 %v732_v25, %v730_v2 }
 0x11f   :  { %v636_v56 = vsub.s32 32, %v635_v49  ;;  %v640_v52 = vsub.s32 4294967266, %v635_v49  ;;  %v637_v20 = vshll.u32 %v628_v59, %v635_v49  ;;  %v734_v59 = vmul.u32 %v732_v25, %v729_v41 }
 0x120   :  { %v739_v47 = vshll.u32 %v735_v32, 16  ;;  %v761_v29 = vshll.u32 %v757_v14, 16  ;;  %vm763_vm15 = vc.u32 %v755_v46, %v759_v7  ;;  %v765_v50 = vadd.s32 %v759_v7, %v755_v46 }
 0x121   :  { %v638_v63 = vshrl.u32 %v620_v16, %v636_v56  ;;  %v641_v55 = vadd.s32 127, %v640_v52  ;;  %v737_v11 = vshll.u32 %v734_v59, 16  ;;  %v764_v44 = vsel %vm763_vm15, 1, %v975_v45 }
 0x122   :  { %v696_v13 = vshrl.u32 %v969_v30, %v1297_v58  ;;  %v766_v52 = vadd.s32 %v764_v44, %v758_v34  ;;  %v717_v41 = vsel %vm715_vm9, %v1333_v42, 2102212464  ;;  %vm767_vm3 = vc.u32 %v765_v50, %v761_v29 }
 0x123   :  { %v639_v31 = vor.u32 %v638_v63, %v637_v20  ;;  %v642_v39 = vshll.u32 %v641_v55, 23  ;;  %vm741_vm1 = vc.u32 %v733_v51, %v737_v11  ;;  %v743_v49 = vadd.s32 %v737_v11, %v733_v51 }
 0x124   :  { %v742_v56 = vsel %vm741_vm1, 1, %v975_v45  ;;  %v512_v62 = vmul.f32 %v511_v17, %v1309_v12  ;;  %v768_v0 = vsel %vm767_vm3, 1, %v975_v45  ;;  %v738_v8 = vshrl.u32 %v734_v59, 16 }
 0x125   :  { %v643_v19 = vor.u32 4788187, %v642_v39  ;;  %v646_v16 = vcvt.s32.f32 %v639_v31  ;;  %v744_v2 = vadd.s32 %v742_v56, %v736_v53  ;;  %vm745_vm2 = vc.u32 %v743_v49, %v739_v47 }
 0x126   :  { %v746_v24 = vsel %vm745_vm2, 1, %v975_v45  ;;  %v760_v30 = vshrl.u32 %v756_v23, 16  ;;  %v770_v58 = vadd.s32 %v768_v0, %v766_v52  ;;  %v716_v42 = vsel %vm712_vm8, %v696_v13, %v1329_v33 }
 0x127   :  { %v644_v38 = vand.u32 2147483647, %v643_v19  ;;  %v748_v20 = vadd.s32 %v746_v24, %v744_v2  ;;  %v718_v55 = vsel %vm714_vm10, %v1331_v15, %v717_v41  ;;  %v740_v60 = vshrl.u32 %v735_v32, 16 }
 0x128   :  { %v762_v25 = vshrl.u32 %v757_v14, 16  ;;  %v771_v23 = vadd.s32 %v770_v58, %v760_v30  ;;  %v345_v31 = vsel %vm1238_vm0, 0, %v1304_v4  ;;  %v360_v39 = vmul.f32 %v359_v37, %v1255_v61 }
 0x129   :  { %v647_v1 = vmul.f32 %v646_v16, %v644_v38  ;;  %v749_v21 = vadd.s32 %v748_v20, %v738_v8  ;;  %v504_v17 = vadd.f32 -0.4999988, %v503_v5  ;;  %v719_v59 = vsel %vm713_vm12, %v716_v42, %v718_v55 }
 0x12a   :  { %v1407_v32 = vadd.s32 %v765_v50, %v761_v29  ;;  %v772_v19 = vadd.s32 %v771_v23, %v762_v25  ;;  %v352_v46 = vadd.f32 1.0, %v351_v6  ;;  %v497_v54 = vsel %vm374_vm4, %v496_v10, %v1190_v35 }
 0x12b   :  { %v648_v22 = vxor.u32 2147483648, %v647_v1  ;;  %v1405_v15 = vadd.s32 %v749_v21, %v740_v60  ;;  %v513_v61 = vadd.f32 1.0, %v512_v62  ;;  %v650_v37 = vsub.s32 4, %v1295_v43 }
 0x12c   :  { %v776_v26 = vadd.s32 1, %v772_v19  ;;  %v362_v5 = vand.u32 3, %v345_v31  ;;  %v773_v6 = vmul.u32 %v1327_v27, %v719_v59  ;;  %v365_v16 = vxor.u32 2147483648, %v360_v39 }
 0x12d   :  { %v649_v63 = vsel %vm528_vm13, %v648_v22, %v647_v1  ;;  %vm775_vm0 = vc.u32 %v1405_v15, %v1407_v32  ;;  %v505_v51 = vmul.f32 %v504_v17, %v1309_v12  ;;  %v499_v35 = vsel %vm1284_vm6, 0, %v497_v54 }
 0x12e   :  { %v652_v45 = vsel %vm1374_vm14, %v1111_v28, %v649_v63  ;;  %v777_v53 = vsel %vm775_vm0, %v776_v26, %v772_v19  ;;  %v368_v47 = vxor.u32 2147483648, %v352_v46  ;;  %v514_v29 = vmul.f32 %v513_v61, %v1293_v57 }
 0x12f   :  { %v654_v33 = vmul.f32 %v652_v45, %v652_v45  ;;  %v778_v38 = vadd.s32 %v777_v53, %v773_v6  ;;  %v651_v49 = vsel %vm528_vm13, %v650_v37, %v1295_v43  ;;  %vm364_vm4 = vcmp.eq.s32.totalorder %v362_v5, 0 }
 0x130   :  { %v366_v1 = vsel %vm364_vm4, %v352_v46, %v365_v16  ;;  %vm367_vm5 = vcmp.eq.s32.totalorder %v362_v5, 2  ;;  %v506_v12 = vadd.f32 1.0, %v505_v51  ;;  %v516_v13 = vand.u32 3, %v499_v35 }
 0x131   :  { %v655_v4 = vmul.f32 -0.001358992, %v654_v33  ;;  %v662_v14 = vmul.f32 -0.00019511016, %v654_v33  ;;  %v779_v50 = vadd.s32 536870912, %v778_v38  ;;  %v653_v48 = vsel %vm1374_vm14, 0, %v651_v49 }
 0x132   :  { %vm363_vm6 = vcmp.lt.s32.totalorder %v362_v5, 2  ;;  %v369_v57 = vsel %vm367_vm5, %v368_v47, %v360_v39  ;;  %v519_v2 = vxor.u32 2147483648, %v514_v29  ;;  %v522_v0 = vxor.u32 2147483648, %v506_v12 }
 0x133   :  { %v656_v34 = vadd.f32 0.041655596, %v655_v4  ;;  %v663_v7 = vadd.f32 0.008332121, %v662_v14  ;;  %v1427_v41 = vshrl.u32 %v779_v50, 30  ;;  %v370_v62 = vsel %vm363_vm6, %v366_v1, %v369_v57 }
 0x134   :  { %v670_v8 = vand.u32 3, %v653_v48  ;;  %vm361_vm7 = vweird.f32 %v1022_v9  ;;  %vm518_vm8 = vcmp.eq.s32.totalorder %v516_v13, 0  ;;  %vm517_vm9 = vcmp.lt.s32.totalorder %v516_v13, 2 }
 0x135   :  { %v657_v10 = vmul.f32 %v656_v34, %v654_v33  ;;  %v664_v11 = vmul.f32 %v663_v7, %v654_v33  ;;  %v781_v24 = vshll.u32 %v1427_v41, 30  ;;  %v371_v30 = vsel %vm361_vm7, nan, %v370_v62 }
 0x136   :  { %v520_v58 = vsel %vm518_vm8, %v506_v12, %v519_v2  ;;  %vm521_vm10 = vcmp.eq.s32.totalorder %v516_v13, 2  ;;  %vm672_vm12 = vcmp.eq.s32.totalorder %v670_v8, 0  ;;  %vm675_vm13 = vcmp.eq.s32.totalorder %v670_v8, 2 }
 0x137   :  { %v658_v44 = vadd.f32 -0.4999988, %v657_v10  ;;  %v665_v27 = vadd.f32 -0.16666654, %v664_v11  ;;  %v782_v36 = vsub.s32 %v778_v38, %v781_v24  ;;  %v523_v60 = vsel %vm521_vm10, %v522_v0, %v514_v29 }
 0x138   :  { %v1434_v21 = vstv %s1465_s0  ;;  %v524_v9 = vsel %vm517_vm9, %v520_v58, %v523_v60  ;;  %vm671_vm14 = vcmp.lt.s32.totalorder %v670_v8, 2  ;;  %vm515_vm15 = vweird.f32 %v1029_v18  ;;  %s976_s0 = smov [#allocation8]  }
 0x139   :  { %v659_v56 = vmul.f32 %v658_v44, %v654_v33  ;;  %v666_v52 = vmul.f32 %v665_v27, %v654_v33  ;;  %vm783_vm11 = vcmp.lt.s32.totalorder %v782_v36, 0  ;;  %v784_v55 = vsub.s32 0, %v782_v36  ;;  %s847_s28 = sshll.u32 %s976_s0, 4  ;;  %s848_s28 = int_to_ptr.vmem [resolvable:$true] %s847_s28 }
 0x13a   :  { %v835_v23 = vmul.f32 %v1434_v21, %v371_v30  ;;  %v525_v33 = vsel %vm515_vm15, nan, %v524_v9  ;;  %vm669_vm1 = vweird.f32 %v1111_v28  ;;  %v774_v4 = vadd.s32 %v1407_v32, %v1405_v15 }
 0x13b   :  { %v660_v43 = vadd.f32 1.0, %v659_v56  ;;  %v667_v22 = vadd.f32 1.0, %v666_v52  ;;  %v836_v54 = vmul.f32 %v1434_v21, %v525_v33  ;;  %vm682_vm3 = vcmp.lt.s32.totalorder %v1247_v3, 0 }
 0x13c   :  { %839 = vst [vmem:[#allocation8] sm:$0xff] %v835_v23  ;;  %vm1446_vm0 = vcmp.le.f32.partialorder %v680_v40, 0.7853982  ;;  %v804_v47 = vsub.s32 4, %v1427_v41  ;;  %vm823_vm7 = vweird.f32 %v1247_v3 }
 0x13d   :  { %v668_v20 = vmul.f32 %v667_v22, %v652_v45  ;;  %v676_v63 = vxor.u32 2147483648, %v660_v43  ;;  %v785_v45 = vsel %vm783_vm11, %v784_v55, %v782_v36  ;;  %840 = vst [vmem:[#allocation8 + $0x8] sm:$0xff] %v836_v54 }
 0x13e   :  { %v786_v39 = vclz %v785_v45  ;;  %v805_v50 = vsel %vm682_vm3, %v804_v47, %v1427_v41 }
 0x13f   :  { %v673_v42 = vxor.u32 2147483648, %v668_v20  ;;  %v677_v31 = vsel %vm675_vm13, %v676_v63, %v668_v20  ;;  %v807_v12 = vsel %vm1446_vm0, 0, %v805_v50 }
 0x140   :  { %v873_v59 = vadd.s32 4294967294, %v786_v39  ;;  %v824_v57 = vand.u32 3, %v807_v12 }
 0x141   :  { %v674_v25 = vsel %vm672_vm12, %v660_v43, %v673_v42 }
 0x142   :  { %v678_v17 = vsel %vm671_vm14, %v674_v25, %v677_v31  ;;  %vm874_vm2 = vcmp.lt.s32.totalorder %v873_v59, 0  ;;  %vm826_vm4 = vcmp.eq.s32.totalorder %v824_v57, 0  ;;  %vm829_vm5 = vcmp.eq.s32.totalorder %v824_v57, 2 }
 0x143   :  { %v679_v19 = vsel %vm669_vm1, nan, %v678_v17  ;;  %v789_v46 = vsel %vm874_vm2, 0, %v873_v59  ;;  %vm825_vm6 = vcmp.lt.s32.totalorder %v824_v57, 2 }
 0x144   :  { %v790_v14 = vsub.s32 32, %v789_v46  ;;  %v794_v61 = vsub.s32 4294967266, %v789_v46  ;;  %v837_v37 = vmul.f32 %v1434_v21, %v679_v19  ;;  %v791_v18 = vshll.u32 %v782_v36, %v789_v46 }
 0x146   :  { %v792_v26 = vshrl.u32 %v774_v4, %v790_v14  ;;  %v795_v5 = vadd.s32 127, %v794_v61  ;;  %841 = vst [vmem:[#allocation8 + $0x10] sm:$0xff] %v837_v37 }
 0x148   :  { %v793_v34 = vor.u32 %v792_v26, %v791_v18  ;;  %v796_v7 = vshll.u32 %v795_v5, 23 }
 0x14a   :  { %v797_v28 = vor.u32 4788187, %v796_v7  ;;  %v800_v16 = vcvt.s32.f32 %v793_v34 }
 0x14c   :  { %v798_v6 = vand.u32 2147483647, %v797_v28 }
 0x14e   :  { %v801_v51 = vmul.f32 %v800_v16, %v798_v6 }
 0x150   :  { %v802_v53 = vxor.u32 2147483648, %v801_v51 }
 0x152   :  { %v803_v32 = vsel %vm682_vm3, %v802_v53, %v801_v51 }
 0x153   :  { %v806_v35 = vsel %vm1446_vm0, %v1247_v3, %v803_v32 }
 0x154   :  { %v808_v10 = vmul.f32 %v806_v35, %v806_v35 }
 0x156   :  { %v809_v11 = vmul.f32 -0.001358992, %v808_v10  ;;  %v816_v38 = vmul.f32 -0.00019511016, %v808_v10 }
 0x158   :  { %v810_v29 = vadd.f32 0.041655596, %v809_v11  ;;  %v817_v49 = vadd.f32 0.008332121, %v816_v38 }
 0x15a   :  { %v811_v44 = vmul.f32 %v810_v29, %v808_v10  ;;  %v818_v27 = vmul.f32 %v817_v49, %v808_v10 }
 0x15c   :  { %v812_v40 = vadd.f32 -0.4999988, %v811_v44  ;;  %v819_v1 = vadd.f32 -0.16666654, %v818_v27 }
 0x15e   :  { %v813_v13 = vmul.f32 %v812_v40, %v808_v10  ;;  %v820_v48 = vmul.f32 %v819_v1, %v808_v10 }
 0x160   :  { %v814_v56 = vadd.f32 1.0, %v813_v13  ;;  %v821_v52 = vadd.f32 1.0, %v820_v48 }
 0x162   :  { %v822_v2 = vmul.f32 %v821_v52, %v806_v35  ;;  %v830_v62 = vxor.u32 2147483648, %v814_v56 }
 0x164   :  { %v827_v43 = vxor.u32 2147483648, %v822_v2  ;;  %v831_v24 = vsel %vm829_vm5, %v830_v62, %v822_v2 }
 0x166   :  { %v828_v22 = vsel %vm826_vm4, %v814_v56, %v827_v43 }
 0x167   :  { %v832_v41 = vsel %vm825_vm6, %v828_v22, %v831_v24 }
 0x168   :  { %v833_v0 = vsel %vm823_vm7, nan, %v832_v41 }
 0x169   :  { %v838_v8 = vmul.f32 %v1434_v21, %v833_v0 }
 0x16b   :  { %842 = vst [vmem:[#allocation8 + $0x18] sm:$0xff] %v838_v8 }
 0x16c   :  { %855 = dma.vmem_to_hbm [thread:$0]  %s848_s28, 512, %s850_s5, [#allocation5], %s966_s23, %s966_s23, %s967_s24  }
 0x16d   :  { %963 = dma.done.wait [#allocation5], 512  }
 0x16e   :  { %964 = vsyncadd [#allocation5], 4294966784 }
 0x16f   :  { %860 = vsyncpa [#allocation4], 1 }
 0x170   :  { %861 = vsyncpa [#allocation7], 1 }
 0x171   :  { %862 = vsyncpa [#allocation5], 1 }

</bundles_post_ra>
